<compile_context>
chip_gen: v7x
topology: tpu7x:2x2x1
jax: 0.10.0
libtpu: 0.0.40
codegen_flags: <defaults>
</compile_context>

<pallas_src>
import math

import jax
import jax.numpy as jnp
from jax.experimental import pallas as pl
from jax.experimental.pallas import tpu as pltpu

LOG_STD_MAX = 2.0
LOG_STD_MIN = -4.0
# Matches the reference's np.log(np.sqrt(2) * np.pi) exactly (NOT log(sqrt(2*pi))).
_LOG_SQRT_2PI = math.log(math.sqrt(2.0) * math.pi)

_LANE = 128


def _round_up(x, m):
    return (x + m - 1) // m * m


def _actor_kernel(obs_ref, noise_ref,
                  w1_ref, b1_ref, w2_ref, b2_ref,
                  wh_ref, bh_ref, scale_ref, loc_ref,
                  log_prob_ref, param_ref):
    # MLP trunk: bf16 MXU inputs, f32 accumulation; elementwise math stays f32.
    x = obs_ref[...].astype(jnp.bfloat16)
    h1 = jnp.maximum(
        jnp.dot(x, w1_ref[...], preferred_element_type=jnp.float32) + b1_ref[...],
        0.0)
    h2 = jnp.maximum(
        jnp.dot(h1.astype(jnp.bfloat16), w2_ref[...],
                preferred_element_type=jnp.float32) + b2_ref[...],
        0.0)

    # Fused mean / log_std heads: one [TB, 2*PP] MXU matmul, split at the
    # lane-aligned PP boundary.
    head = jnp.dot(h2.astype(jnp.bfloat16), wh_ref[...],
                   preferred_element_type=jnp.float32) + bh_ref[...]
    pp = head.shape[-1] // 2
    mean = head[:, :pp]
    log_std = jnp.clip(head[:, pp:], LOG_STD_MIN, LOG_STD_MAX)
    std = jnp.exp(log_std)

    # Reparameterized sample (noise == 0 reproduces deterministic=True).
    dev = std * noise_ref[...]            # == action - mean
    action = mean + dev

    # Gaussian log-prob (elementwise, matching the reference formula).
    # Divide replaced by an EUP approximate reciprocal.
    z = dev * pl.reciprocal(std + 1e-6, approx=True)
    log_prob = -0.5 * z * z - log_std - _LOG_SQRT_2PI

    # tanh squash + change-of-variables correction + affine rescale.
    a = jnp.tanh(action)
    scale = scale_ref[...]                # (1, PP), broadcasts over the batch
    log_prob = log_prob - jnp.log(scale * (1.0 - a * a) + 1e-6)
    param = a * scale + loc_ref[...]

    log_prob_ref[...] = log_prob
    param_ref[...] = param


def mpc_sac_actor_forward(obs, noise, params, *, block_b=None):
    """Runs the Pallas kernel. Returns (log_prob, param), each [B, param_dim]."""
    obs = obs.astype(jnp.float32)
    noise = noise.astype(jnp.float32)
    B, obs_dim = obs.shape
    P = params["param_dim"]               # true (unpadded) parameter dim
    PP = params["loc"].shape[-1]          # lane-padded parameter dim

    # Lane-pad noise to the padded parameter width (padded lanes carry zeros).
    if noise.shape[-1] != PP:
        noise = jnp.pad(noise, ((0, 0), (0, PP - noise.shape[-1])))

    # Batch tile: modest default so double-buffered tiles fit v7x's 64 MiB VMEM.
    if block_b is None:
        block_b = min(_round_up(max(B, 1), 8), 512)
    B_pad = _round_up(B, block_b)
    if B_pad != B:
        obs = jnp.pad(obs, ((0, B_pad - B), (0, 0)))
        noise = jnp.pad(noise, ((0, B_pad - B), (0, 0)))
    grid = (B_pad // block_b,)

    # Explicit VMEM budget: streamed tiles (double-buffered) + resident weights.
    blk_bytes = block_b * (obs_dim + 3 * PP) * 4
    w_bytes = ((params["w1"].size + params["w2"].size + params["wh"].size) * 2
               + (params["b1"].size + params["b2"].size + params["bh"].size
                  + params["scale"].size + params["loc"].size) * 4)
    vmem_limit = int(min(max(4 * blk_bytes + 2 * w_bytes + (8 << 20), 16 << 20),
                         48 << 20))

    def batch_spec(last):
        return pl.BlockSpec((block_b, last), lambda i: (i, 0))

    def const_spec(shape):
        return pl.BlockSpec(shape, lambda i: (0, 0))

    log_prob, param = pl.pallas_call(
        _actor_kernel,
        out_shape=(jax.ShapeDtypeStruct((B_pad, PP), jnp.float32),
                   jax.ShapeDtypeStruct((B_pad, PP), jnp.float32)),
        grid=grid,
        in_specs=[
            batch_spec(obs_dim),               # obs   (streamed)
            batch_spec(PP),                    # noise (streamed)
            const_spec(params["w1"].shape),    # weights: resident across grid
            const_spec(params["b1"].shape),
            const_spec(params["w2"].shape),
            const_spec(params["b2"].shape),
            const_spec(params["wh"].shape),
            const_spec(params["bh"].shape),
            const_spec(params["scale"].shape),
            const_spec(params["loc"].shape),
        ],
        out_specs=(batch_spec(PP), batch_spec(PP)),
        compiler_params=pltpu.CompilerParams(
            dimension_semantics=("parallel",),
            vmem_limit_bytes=vmem_limit),
    )(obs, noise,
      params["w1"], params["b1"], params["w2"], params["b2"],
      params["wh"], params["bh"], params["scale"], params["loc"])

    return log_prob[:B, :P], param[:B, :P]


def init_params(key, obs_dim, hidden, param_dim):
    """Zero-padded, lane-dense, fused-head parameters (bf16 weights, f32 biases)."""
    Hp = _round_up(hidden, _LANE)
    PP = _round_up(param_dim, _LANE)
    ks = jax.random.split(key, 4)

    def glorot(k, fan_in, fan_out, pad_in, pad_out):
        lim = math.sqrt(6.0 / (fan_in + fan_out))
        w = jax.random.uniform(k, (fan_in, fan_out), jnp.float32, -lim, lim)
        w = jnp.pad(w, ((0, pad_in - fan_in), (0, pad_out - fan_out)))
        return w.astype(jnp.bfloat16)

    w1 = glorot(ks[0], obs_dim, hidden, obs_dim, Hp)
    w2 = glorot(ks[1], hidden, hidden, Hp, Hp)
    wm = glorot(ks[2], hidden, param_dim, Hp, PP)
    ws = glorot(ks[3], hidden, param_dim, Hp, PP)
    wh = jnp.concatenate([wm, ws], axis=1)          # fused heads: [Hp, 2*PP]

    # param_space bounds -> loc/scale buffers (deterministic synthetic values).
    low = -1.0 - 0.1 * jnp.arange(param_dim, dtype=jnp.float32)
    high = 1.0 + 0.2 * jnp.arange(param_dim, dtype=jnp.float32)
    loc = ((high + low) / 2.0)
    scale = ((high - low) / 2.0)
    loc = jnp.pad(loc, (0, PP - param_dim)).reshape(1, PP)
    scale = jnp.pad(scale, (0, PP - param_dim), constant_values=1.0).reshape(1, PP)

    return dict(
        w1=w1, b1=jnp.zeros((1, Hp), jnp.float32),
        w2=w2, b2=jnp.zeros((1, Hp), jnp.float32),
        wh=wh, bh=jnp.zeros((1, 2 * PP), jnp.float32),
        scale=scale, loc=loc, param_dim=param_dim,
    )


if __name__ == "__main__":
    B, OBS_DIM, HIDDEN, PARAM_DIM = 8, 16, 32, 4

    key = jax.random.PRNGKey(0)
    k_obs, k_noise, k_params = jax.random.split(key, 3)

    obs = jax.random.normal(k_obs, (B, OBS_DIM), jnp.float32)
    # Stochastic branch: noise ~ N(0,1).  Pass zeros to get deterministic=True.
    noise = jax.random.normal(k_noise, (B, PARAM_DIM), jnp.float32)
    params = init_params(k_params, OBS_DIM, HIDDEN, PARAM_DIM)

    log_prob, param = mpc_sac_actor_forward(obs, noise, params)
    jax.block_until_ready((log_prob, param))

    assert log_prob.shape == (B, PARAM_DIM) and param.shape == (B, PARAM_DIM)
    assert bool(jnp.all(jnp.isfinite(log_prob))) and bool(jnp.all(jnp.isfinite(param)))
    print("KERNEL_OK")
</pallas_src>

<mosaic_0001>
module attributes {stable_mosaic.version = 11 : i64} {
  func.func @_actor_kernel(%arg0: i32, %arg1: memref<8x16xf32, #tpu.memory_space<vmem>>, %arg2: memref<8x128xf32, #tpu.memory_space<vmem>>, %arg3: memref<16x128xbf16, #tpu.memory_space<vmem>>, %arg4: memref<1x128xf32, #tpu.memory_space<vmem>>, %arg5: memref<128x128xbf16, #tpu.memory_space<vmem>>, %arg6: memref<1x128xf32, #tpu.memory_space<vmem>>, %arg7: memref<128x256xbf16, #tpu.memory_space<vmem>>, %arg8: memref<1x256xf32, #tpu.memory_space<vmem>>, %arg9: memref<1x128xf32, #tpu.memory_space<vmem>>, %arg10: memref<1x128xf32, #tpu.memory_space<vmem>>, %arg11: memref<8x128xf32, #tpu.memory_space<vmem>>, %arg12: memref<8x128xf32, #tpu.memory_space<vmem>>) attributes {dimension_semantics = [#tpu.dimension_semantics<parallel>], iteration_bounds = array<i64: 1>, scalar_prefetch = 0 : i64, scratch_operands = 0 : i64, tpu.core_type = #tpu.core_type<tc>, window_params = [{transform_indices = @transform_0, window_bounds = array<i64: 8, 16>}, {transform_indices = @transform_1, window_bounds = array<i64: 8, 128>}, {pipeline_mode = #tpu.pipeline_mode<synchronous>, transform_indices = @transform_2, window_bounds = array<i64: 16, 128>}, {pipeline_mode = #tpu.pipeline_mode<synchronous>, transform_indices = @transform_3, window_bounds = array<i64: 1, 128>}, {pipeline_mode = #tpu.pipeline_mode<synchronous>, transform_indices = @transform_4, window_bounds = array<i64: 128, 128>}, {pipeline_mode = #tpu.pipeline_mode<synchronous>, transform_indices = @transform_5, window_bounds = array<i64: 1, 128>}, {pipeline_mode = #tpu.pipeline_mode<synchronous>, transform_indices = @transform_6, window_bounds = array<i64: 128, 256>}, {pipeline_mode = #tpu.pipeline_mode<synchronous>, transform_indices = @transform_7, window_bounds = array<i64: 1, 256>}, {pipeline_mode = #tpu.pipeline_mode<synchronous>, transform_indices = @transform_8, window_bounds = array<i64: 1, 128>}, {pipeline_mode = #tpu.pipeline_mode<synchronous>, transform_indices = @transform_9, window_bounds = array<i64: 1, 128>}, {transform_indices = @transform_10, window_bounds = array<i64: 8, 128>}, {transform_indices = @transform_11, window_bounds = array<i64: 8, 128>}]} {
    %c0 = arith.constant 0 : index
    %c0_0 = arith.constant 0 : index
    %0 = vector.load %arg1[%c0, %c0_0] : memref<8x16xf32, #tpu.memory_space<vmem>>, vector<8x16xf32>
    %1 = arith.truncf %0 : vector<8x16xf32> to vector<8x16xbf16>
    %c0_1 = arith.constant 0 : index
    %c0_2 = arith.constant 0 : index
    %2 = vector.load %arg3[%c0_1, %c0_2] : memref<16x128xbf16, #tpu.memory_space<vmem>>, vector<16x128xbf16>
    %cst = arith.constant dense<0.000000e+00> : vector<8x128xf32>
    %3 = tpu.matmul %1, %2, %cst {dimension_numbers = #tpu.dot_dimension_numbers<[1], [0], [0], [1], [0, 0, 1, 1], [], []>} : vector<8x16xbf16>, vector<16x128xbf16>, vector<8x128xf32> -> vector<8x128xf32>
    %c0_3 = arith.constant 0 : index
    %c0_4 = arith.constant 0 : index
    %4 = vector.load %arg4[%c0_3, %c0_4] : memref<1x128xf32, #tpu.memory_space<vmem>>, vector<1x128xf32>
    %5 = vector.broadcast %4 : vector<1x128xf32> to vector<8x128xf32>
    %6 = arith.addf %3, %5 : vector<8x128xf32>
    %cst_5 = arith.constant 0.000000e+00 : f32
    %7 = vector.broadcast %cst_5 : f32 to vector<8x128xf32>
    %8 = arith.maximumf %6, %7 : vector<8x128xf32>
    %9 = arith.truncf %8 : vector<8x128xf32> to vector<8x128xbf16>
    %c0_6 = arith.constant 0 : index
    %c0_7 = arith.constant 0 : index
    %10 = vector.load %arg5[%c0_6, %c0_7] : memref<128x128xbf16, #tpu.memory_space<vmem>>, vector<128x128xbf16>
    %cst_8 = arith.constant dense<0.000000e+00> : vector<8x128xf32>
    %11 = tpu.matmul %9, %10, %cst_8 {dimension_numbers = #tpu.dot_dimension_numbers<[1], [0], [0], [1], [0, 0, 1, 1], [], []>} : vector<8x128xbf16>, vector<128x128xbf16>, vector<8x128xf32> -> vector<8x128xf32>
    %c0_9 = arith.constant 0 : index
    %c0_10 = arith.constant 0 : index
    %12 = vector.load %arg6[%c0_9, %c0_10] : memref<1x128xf32, #tpu.memory_space<vmem>>, vector<1x128xf32>
    %13 = vector.broadcast %12 : vector<1x128xf32> to vector<8x128xf32>
    %14 = arith.addf %11, %13 : vector<8x128xf32>
    %cst_11 = arith.constant 0.000000e+00 : f32
    %15 = vector.broadcast %cst_11 : f32 to vector<8x128xf32>
    %16 = arith.maximumf %14, %15 : vector<8x128xf32>
    %17 = arith.truncf %16 : vector<8x128xf32> to vector<8x128xbf16>
    %c0_12 = arith.constant 0 : index
    %c0_13 = arith.constant 0 : index
    %18 = vector.load %arg7[%c0_12, %c0_13] : memref<128x256xbf16, #tpu.memory_space<vmem>>, vector<128x256xbf16>
    %cst_14 = arith.constant dense<0.000000e+00> : vector<8x256xf32>
    %19 = tpu.matmul %17, %18, %cst_14 {dimension_numbers = #tpu.dot_dimension_numbers<[1], [0], [0], [1], [0, 0, 1, 1], [], []>} : vector<8x128xbf16>, vector<128x256xbf16>, vector<8x256xf32> -> vector<8x256xf32>
    %c0_15 = arith.constant 0 : index
    %c0_16 = arith.constant 0 : index
    %20 = vector.load %arg8[%c0_15, %c0_16] : memref<1x256xf32, #tpu.memory_space<vmem>>, vector<1x256xf32>
    %21 = vector.broadcast %20 : vector<1x256xf32> to vector<8x256xf32>
    %22 = arith.addf %19, %21 : vector<8x256xf32>
    %23 = vector.extract_strided_slice %22 {offsets = [0, 0], sizes = [8, 128], strides = [1, 1]} : vector<8x256xf32> to vector<8x128xf32>
    %24 = vector.extract_strided_slice %22 {offsets = [0, 128], sizes = [8, 128], strides = [1, 1]} : vector<8x256xf32> to vector<8x128xf32>
    %cst_17 = arith.constant -4.000000e+00 : f32
    %cst_18 = arith.constant 2.000000e+00 : f32
    %25 = vector.broadcast %cst_17 : f32 to vector<8x128xf32>
    %26 = arith.maximumf %25, %24 : vector<8x128xf32>
    %27 = vector.broadcast %cst_18 : f32 to vector<8x128xf32>
    %28 = arith.minimumf %27, %26 : vector<8x128xf32>
    %29 = math.exp %28 : vector<8x128xf32>
    %c0_19 = arith.constant 0 : index
    %c0_20 = arith.constant 0 : index
    %30 = vector.load %arg2[%c0_19, %c0_20] : memref<8x128xf32, #tpu.memory_space<vmem>>, vector<8x128xf32>
    %31 = arith.mulf %29, %30 : vector<8x128xf32>
    %32 = arith.addf %23, %31 : vector<8x128xf32>
    %cst_21 = arith.constant 9.99999997E-7 : f32
    %33 = vector.broadcast %cst_21 : f32 to vector<8x128xf32>
    %34 = arith.addf %29, %33 : vector<8x128xf32>
    %35 = tpu.reciprocal %34 {approx = true} : vector<8x128xf32> -> vector<8x128xf32>
    %36 = arith.mulf %31, %35 : vector<8x128xf32>
    %cst_22 = arith.constant -5.000000e-01 : f32
    %37 = vector.broadcast %cst_22 : f32 to vector<8x128xf32>
    %38 = arith.mulf %37, %36 : vector<8x128xf32>
    %39 = arith.mulf %38, %36 : vector<8x128xf32>
    %40 = arith.subf %39, %28 : vector<8x128xf32>
    %cst_23 = arith.constant 1.49130344 : f32
    %41 = vector.broadcast %cst_23 : f32 to vector<8x128xf32>
    %42 = arith.subf %40, %41 : vector<8x128xf32>
    %43 = math.tanh %32 : vector<8x128xf32>
    %c0_24 = arith.constant 0 : index
    %c0_25 = arith.constant 0 : index
    %44 = vector.load %arg9[%c0_24, %c0_25] : memref<1x128xf32, #tpu.memory_space<vmem>>, vector<1x128xf32>
    %45 = arith.mulf %43, %43 : vector<8x128xf32>
    %cst_26 = arith.constant 1.000000e+00 : f32
    %46 = vector.broadcast %cst_26 : f32 to vector<8x128xf32>
    %47 = arith.subf %46, %45 : vector<8x128xf32>
    %48 = vector.broadcast %44 : vector<1x128xf32> to vector<8x128xf32>
    %49 = arith.mulf %48, %47 : vector<8x128xf32>
    %cst_27 = arith.constant 9.99999997E-7 : f32
    %50 = vector.broadcast %cst_27 : f32 to vector<8x128xf32>
    %51 = arith.addf %49, %50 : vector<8x128xf32>
    %52 = math.log %51 : vector<8x128xf32>
    %53 = arith.subf %42, %52 : vector<8x128xf32>
    %54 = vector.broadcast %44 : vector<1x128xf32> to vector<8x128xf32>
    %55 = arith.mulf %43, %54 : vector<8x128xf32>
    %c0_28 = arith.constant 0 : index
    %c0_29 = arith.constant 0 : index
    %56 = vector.load %arg10[%c0_28, %c0_29] : memref<1x128xf32, #tpu.memory_space<vmem>>, vector<1x128xf32>
    %57 = vector.broadcast %56 : vector<1x128xf32> to vector<8x128xf32>
    %58 = arith.addf %55, %57 : vector<8x128xf32>
    %c0_30 = arith.constant 0 : index
    %c0_31 = arith.constant 0 : index
    %59 = vector.load %arg11[%c0_30, %c0_31] : memref<8x128xf32, #tpu.memory_space<vmem>>, vector<8x128xf32>
    tpu.vector_store %arg11[%c0_30, %c0_31], %53 {strides = array<i32>} : memref<8x128xf32, #tpu.memory_space<vmem>>, vector<8x128xf32>,
    %c0_32 = arith.constant 0 : index
    %c0_33 = arith.constant 0 : index
    %60 = vector.load %arg12[%c0_32, %c0_33] : memref<8x128xf32, #tpu.memory_space<vmem>>, vector<8x128xf32>
    tpu.vector_store %arg12[%c0_32, %c0_33], %58 {strides = array<i32>} : memref<8x128xf32, #tpu.memory_space<vmem>>, vector<8x128xf32>,
    return
  }
  func.func @transform_0(%arg0: i32) -> (i32, i32) {
    %c0_i32 = arith.constant 0 : i32
    %c0_i32_0 = arith.constant 0 : i32
    return %arg0, %c0_i32 : i32, i32
  }
  func.func @transform_1(%arg0: i32) -> (i32, i32) {
    %c0_i32 = arith.constant 0 : i32
    %c0_i32_0 = arith.constant 0 : i32
    return %arg0, %c0_i32 : i32, i32
  }
  func.func @transform_2(%arg0: i32) -> (i32, i32) {
    %c0_i32 = arith.constant 0 : i32
    %c0_i32_0 = arith.constant 0 : i32
    %c0_i32_1 = arith.constant 0 : i32
    return %c0_i32, %c0_i32_0 : i32, i32
  }
  func.func @transform_3(%arg0: i32) -> (i32, i32) {
    %c0_i32 = arith.constant 0 : i32
    %c0_i32_0 = arith.constant 0 : i32
    %c0_i32_1 = arith.constant 0 : i32
    return %c0_i32, %c0_i32_0 : i32, i32
  }
  func.func @transform_4(%arg0: i32) -> (i32, i32) {
    %c0_i32 = arith.constant 0 : i32
    %c0_i32_0 = arith.constant 0 : i32
    %c0_i32_1 = arith.constant 0 : i32
    return %c0_i32, %c0_i32_0 : i32, i32
  }
  func.func @transform_5(%arg0: i32) -> (i32, i32) {
    %c0_i32 = arith.constant 0 : i32
    %c0_i32_0 = arith.constant 0 : i32
    %c0_i32_1 = arith.constant 0 : i32
    return %c0_i32, %c0_i32_0 : i32, i32
  }
  func.func @transform_6(%arg0: i32) -> (i32, i32) {
    %c0_i32 = arith.constant 0 : i32
    %c0_i32_0 = arith.constant 0 : i32
    %c0_i32_1 = arith.constant 0 : i32
    return %c0_i32, %c0_i32_0 : i32, i32
  }
  func.func @transform_7(%arg0: i32) -> (i32, i32) {
    %c0_i32 = arith.constant 0 : i32
    %c0_i32_0 = arith.constant 0 : i32
    %c0_i32_1 = arith.constant 0 : i32
    return %c0_i32, %c0_i32_0 : i32, i32
  }
  func.func @transform_8(%arg0: i32) -> (i32, i32) {
    %c0_i32 = arith.constant 0 : i32
    %c0_i32_0 = arith.constant 0 : i32
    %c0_i32_1 = arith.constant 0 : i32
    return %c0_i32, %c0_i32_0 : i32, i32
  }
  func.func @transform_9(%arg0: i32) -> (i32, i32) {
    %c0_i32 = arith.constant 0 : i32
    %c0_i32_0 = arith.constant 0 : i32
    %c0_i32_1 = arith.constant 0 : i32
    return %c0_i32, %c0_i32_0 : i32, i32
  }
  func.func @transform_10(%arg0: i32) -> (i32, i32) {
    %c0_i32 = arith.constant 0 : i32
    %c0_i32_0 = arith.constant 0 : i32
    return %arg0, %c0_i32 : i32, i32
  }
  func.func @transform_11(%arg0: i32) -> (i32, i32) {
    %c0_i32 = arith.constant 0 : i32
    %c0_i32_0 = arith.constant 0 : i32
    return %arg0, %c0_i32 : i32, i32
  }
}

</mosaic_0001>

<bundles_post_ra>
// kernel: tpu_custom_call.1
= control target key start
LH: loop header
LB: loop body
LE: loop exit
PB: predicated region body
PF: predicated region fallthrough
CT: control target
= control target key end

     0   :  { %17 = vsyncpa [#allocation3], 0  ;;  %s966_s0 = inlined_call_operand.hbm [shape: f32[8,16], index: 0, kind: input, shape index: {}]   ;;  %s967_s1 = inlined_call_operand.hbm [shape: f32[8,128], index: 1, kind: input, shape index: {}]   ;;  %s968_s2 = inlined_call_operand.hbm [shape: bf16[16,128], index: 2, kind: input, shape index: {}]   ;;  %s969_s3 = inlined_call_operand.vmem [shape: f32[1,128], index: 3, kind: input, shape index: {}]   ;;  %s970_s4 = inlined_call_operand.hbm [shape: bf16[128,128], index: 4, kind: input, shape index: {}]   ;;  %s971_s5 = inlined_call_operand.vmem [shape: f32[1,128], index: 5, kind: input, shape index: {}]   ;;  %s972_s6 = inlined_call_operand.hbm [shape: bf16[128,256], index: 6, kind: input, shape index: {}]   ;;  %s973_s7 = inlined_call_operand.vmem [shape: f32[1,256], index: 7, kind: input, shape index: {}]   ;;  %s974_s8 = inlined_call_operand.vmem [shape: f32[1,128], index: 8, kind: input, shape index: {}]   ;;  %s975_s9 = inlined_call_operand.vmem [shape: f32[1,128], index: 9, kind: input, shape index: {}]   ;;  %s976_s10 = inlined_call_operand.hbm [shape: f32[8,128], index: 10, kind: output, shape index: {0}]   ;;  %s977_s11 = inlined_call_operand.hbm [shape: f32[8,128], index: 11, kind: output, shape index: {1}]  }
   0x1   :  { %18 = vsyncpa [#allocation6], 0 }
   0x2   :  { %19 = vsyncpa [#allocation9], 0 }
   0x3   :  { %20 = vsyncpa [#allocation4], 0 }
   0x4   :  { %21 = vsyncpa [#allocation13], 0  ;;  %s787_s17 = smov [#allocation5]   ;;  %s623_s21 = scalar_lea.hbm %s967_s1, 128 }
   0x5   :  { %s38_s18 = sshll.u32 %s787_s17, 4  ;;  %p624_p0 = scmp.ne.s32.totalorder %s967_s1, %s623_s21  ;;  %s39_s18 = int_to_ptr.vmem [resolvable:$true] %s38_s18 }
   0x6   :  { %p627_p1 = scmp.lt.u32.totalorder %s623_s21, %s967_s1 }
   0x8   :  { %p629_p2 = pnand %p627_p1, %p624_p0 }
   0xa   :  { %632 = shalt.err (!%p629_p2)
}
   0xb   :  { %s633_s26 = scalar_lea.vmem %s39_s18, 128  ;;  %p638_p4 = scmp.lt.s32.totalorder %s39_s18, %s39_s18 }
   0xc   :  { %p634_p3 = scmp.ne.s32.totalorder %s39_s18, %s633_s26  ;;  %p639_p5 = scmp.lt.s32.totalorder %s633_s26, %s633_s26 }
   0xe   :  { %p640_p6 = por %p639_p5, %p638_p4 }
  0x10   :  { %p641_p7 = pnand %p640_p6, %p634_p3 }
  0x12   :  { %644 = shalt.err (!%p641_p7)
}
  0x13   :  { %41 = dma.hbm_to_vmem [thread:$0]  %s967_s1, 128, %s39_s18, [#allocation6]  }
  0x14   :  { %s788_s29 = smov [#allocation8]   ;;  %s789_s12 = smov [#allocation2]  }
  0x15   :  { %s61_s30 = sshll.u32 %s788_s29, 4  ;;  %s28_s13 = sshll.u32 %s789_s12, 4  ;;  %s62_s30 = int_to_ptr.vmem [resolvable:$true] %s61_s30  ;;  %s29_s13 = int_to_ptr.vmem [resolvable:$true] %s28_s13 }
  0x16   :  { %s645_s16 = scalar_lea.hbm %s970_s4, 1024 }
  0x17   :  { %p646_p8 = scmp.ne.s32.totalorder %s970_s4, %s645_s16  ;;  %p649_p9 = scmp.lt.u32.totalorder %s645_s16, %s970_s4 }
  0x19   :  { %p651_p10 = pnand %p649_p9, %p646_p8 }
  0x1b   :  { %654 = shalt.err (!%p651_p10)
}
  0x1c   :  { %s655_s1 = scalar_lea.vmem %s62_s30, 1024  ;;  %p660_p12 = scmp.lt.s32.totalorder %s62_s30, %s62_s30 }
  0x1d   :  { %p656_p11 = scmp.ne.s32.totalorder %s62_s30, %s655_s1  ;;  %p661_p13 = scmp.lt.s32.totalorder %s655_s1, %s655_s1 }
  0x1f   :  { %p662_p0 = por %p661_p13, %p660_p12 }
  0x21   :  { %p663_p1 = pnand %p662_p0, %p656_p11 }
  0x23   :  { %666 = shalt.err (!%p663_p1)
}
  0x24   :  { %s790_s18 = smov 64   ;;  %s791_s22 = smov 4  }
  0x25   :  { %67 = dma.hbm_to_vmem [thread:$0]  %s970_s4, 1024, %s62_s30, [#allocation9], %s790_s18, %s790_s18, %s791_s22  }
  0x26   :  { %s667_s27 = scalar_lea.hbm %s966_s0, 128 }
  0x27   :  { %p668_p2 = scmp.ne.s32.totalorder %s966_s0, %s667_s27  ;;  %p671_p3 = scmp.lt.u32.totalorder %s667_s27, %s966_s0 }
  0x29   :  { %p673_p4 = pnand %p671_p3, %p668_p2 }
  0x2b   :  { %676 = shalt.err (!%p673_p4)
}
  0x2c   :  { %s677_s15 = scalar_lea.vmem %s29_s13, 128  ;;  %p682_p6 = scmp.lt.s32.totalorder %s29_s13, %s29_s13 }
  0x2d   :  { %p678_p5 = scmp.ne.s32.totalorder %s29_s13, %s677_s15  ;;  %p683_p7 = scmp.lt.s32.totalorder %s677_s15, %s677_s15 }
  0x2f   :  { %p684_p8 = por %p683_p7, %p682_p6 }
  0x31   :  { %p685_p9 = pnand %p684_p8, %p678_p5 }
  0x33   :  { %688 = shalt.err (!%p685_p9)
}
  0x34   :  { %31 = dma.hbm_to_vmem [thread:$0]  %s966_s0, 128, %s29_s13, [#allocation3]  }
  0x35   :  { %s792_s16 = smov [#allocation7]   ;;  %s793_s19 = smov [#allocation10]  }
  0x36   :  { %s47_s17 = sshll.u32 %s792_s16, 4  ;;  %s75_s20 = sshll.u32 %s793_s19, 4  ;;  %s48_s17 = int_to_ptr.vmem [resolvable:$true] %s47_s17  ;;  %s76_s20 = int_to_ptr.vmem [resolvable:$true] %s75_s20 }
  0x37   :  { %s689_s23 = scalar_lea.hbm %s968_s2, 128 }
  0x38   :  { %p690_p10 = scmp.ne.s32.totalorder %s968_s2, %s689_s23  ;;  %p693_p11 = scmp.lt.u32.totalorder %s689_s23, %s968_s2 }
  0x3a   :  { %p695_p12 = pnand %p693_p11, %p690_p10 }
  0x3c   :  { %698 = shalt.err (!%p695_p12)
}
  0x3d   :  { %s699_s0 = scalar_lea.vmem %s48_s17, 128  ;;  %p704_p0 = scmp.lt.s32.totalorder %s48_s17, %s48_s17 }
  0x3e   :  { %p700_p13 = scmp.ne.s32.totalorder %s48_s17, %s699_s0  ;;  %p705_p1 = scmp.lt.s32.totalorder %s699_s0, %s699_s0 }
  0x40   :  { %p706_p2 = por %p705_p1, %p704_p0 }
  0x42   :  { %p707_p3 = pnand %p706_p2, %p700_p13 }
  0x44   :  { %710 = shalt.err (!%p707_p3)
}
  0x45   :  { %53 = dma.hbm_to_vmem [thread:$0]  %s968_s2, 128, %s48_s17, [#allocation6], %s790_s18, %s790_s18, %s791_s22  }
  0x46   :  { %s711_s14 = scalar_lea.hbm %s972_s6, 2048 }
  0x47   :  { %p712_p4 = scmp.ne.s32.totalorder %s972_s6, %s711_s14  ;;  %p715_p5 = scmp.lt.u32.totalorder %s711_s14, %s972_s6 }
  0x49   :  { %p717_p6 = pnand %p715_p5, %p712_p4 }
  0x4b   :  { %720 = shalt.err (!%p717_p6)
}
  0x4c   :  { %s721_s19 = scalar_lea.vmem %s76_s20, 2048  ;;  %p726_p8 = scmp.lt.s32.totalorder %s76_s20, %s76_s20 }
  0x4d   :  { %p722_p7 = scmp.ne.s32.totalorder %s76_s20, %s721_s19  ;;  %p727_p9 = scmp.lt.s32.totalorder %s721_s19, %s721_s19 }
  0x4f   :  { %p728_p10 = por %p727_p9, %p726_p8 }
  0x51   :  { %p729_p11 = pnand %p728_p10, %p722_p7 }
  0x53   :  { %732 = shalt.err (!%p729_p11)
}
  0x54   :  { %s794_s2 = smov 128   ;;  %s795_s18 = smov 8  }
  0x55   :  { %81 = dma.hbm_to_vmem [thread:$0]  %s972_s6, 2048, %s76_s20, [#allocation9], %s794_s2, %s794_s2, %s795_s18  }
  0x56   :  { %777 = dma.done.wait [#allocation3], 128  }
  0x57   :  { %778 = vsyncadd [#allocation3], 4294967168 }
  0x58   :  { %779 = dma.done.wait [#allocation6], 256  }
  0x59   :  { %780 = vsyncadd [#allocation6], 4294967040 }
  0x5a   :  { %781 = dma.done.wait [#allocation9], 3072  }
  0x5b   :  { %782 = vsyncadd [#allocation9], 4294964224  ;;  %v796_v0 = vmov 0.0   ;;  %vm797_vm0 = vmmov 0   ;;  %v582_v1 = vld [vmem:[#allocation7] sm:$0xff]   ;;  %v104_v2 = vld [vmem:[#allocation2] sm:$0xff]  ;;  %v298_v45 = vlaneseq }
  0x5c   :  { %542 = vmatprep.subr.bf16.mxu0 %v796_v0  ;;  %544 = vmatprep.mubr.msk.bf16.mxu0 %vm797_vm0, %v796_v0  ;;  %v105_v3 = vpack.c.bf16 %v104_v2, %v104_v2  ;;  %vm121_vm1 = vcmask 130048   ;;  %v583_v4 = vld [vmem:[#allocation8] sm:$0xff]   ;;  %v584_v5 = vld [vmem:[#allocation8 + $0x8] sm:$0xff]   ;;  %v585_v6 = vld [vmem:[#allocation8 + $0x10] sm:$0xff]   ;;  %v798_v36 = vmov 0   ;;  %s799_s26 = smov [#allocation12]  }
  0x5d   :  { %548 = vmatprep.subr.bf16.mxu1 %v796_v0  ;;  %564 = vmatprep.mubr.msk.bf16.mxu1 %vm797_vm0, %v796_v0  ;;  %v586_v7 = vld [vmem:[#allocation8 + $0x18] sm:$0xff]   ;;  %v587_v8 = vld [vmem:[#allocation8 + $0x20] sm:$0xff]   ;;  %v588_v9 = vld [vmem:[#allocation8 + $0x28] sm:$0xff]   ;;  %v299_v46 = vshrl.u32 %v298_v45, 7  ;;  %s485_s27 = sshll.u32 %s799_s26, 4  ;;  %s486_s27 = int_to_ptr.vmem [resolvable:$true] %s485_s27 }
  0x5e   :  { %543 = vmatpush3.bf16.msra.mxu0 %v582_v1  ;;  %549 = vmatpush3.bf16.msra.mxu1 %v583_v4  ;;  %v589_v10 = vld [vmem:[#allocation8 + $0x30] sm:$0xff]   ;;  %v590_v11 = vld [vmem:[#allocation8 + $0x38] sm:$0xff]   ;;  %v591_v12 = vld [vmem:[#allocation10] ss:$8 sps:$4 sm:$0xff]   ;;  %s733_s0 = scalar_lea.vmem %s486_s27, 128  ;;  %p738_p13 = scmp.lt.s32.totalorder %s486_s27, %s486_s27 }
  0x5f   :  { %550 = vmatprep.subr.bf16.mxu1 %v796_v0  ;;  %v593_v13 = vld [vmem:[#allocation10 + $0x4] ss:$8 sps:$4 sm:$0xff]   ;;  %v596_v14 = vld [vmem:[#allocation10 + $0x14] ss:$8 sps:$4 sm:$0xff]   ;;  %v594_v15 = vld [vmem:[#allocation10 + $0x10] ss:$8 sps:$4 sm:$0xff]   ;;  %p734_p12 = scmp.ne.s32.totalorder %s486_s27, %s733_s0  ;;  %p739_p0 = scmp.lt.s32.totalorder %s733_s0, %s733_s0 }
  0x60   :  { %388 = vmatprep.subr.bf16.mxu0 %v593_v13  ;;  %v599_v16 = vld [vmem:[#allocation10 + $0x24] ss:$8 sps:$4 sm:$0xff]   ;;  %v597_v17 = vld [vmem:[#allocation10 + $0x20] ss:$8 sps:$4 sm:$0xff]   ;;  %v602_v18 = vld [vmem:[#allocation10 + $0x34] ss:$8 sps:$4 sm:$0xff]  }
  0x61   :  { %545 = vmatmul.mubr.msk.bf16.vlgmr.msra.gmra.mrb[0].mxu0 %vm121_vm1, %v105_v3  ;;  %v600_v19 = vld [vmem:[#allocation10 + $0x30] ss:$8 sps:$4 sm:$0xff]   ;;  %v605_v20 = vld [vmem:[#allocation10 + $0x44] ss:$8 sps:$4 sm:$0xff]   ;;  %v603_v21 = vld [vmem:[#allocation10 + $0x40] ss:$8 sps:$4 sm:$0xff]   ;;  %p740_p1 = por %p739_p0, %p738_p13 }
  0x62   :  { %551 = vmatpush3.bf16.msra.mxu1 %v584_v5  ;;  %389 = vmatpush1.bf16.msra.mxu0 %v591_v12  ;;  %v608_v22 = vld [vmem:[#allocation10 + $0x54] ss:$8 sps:$4 sm:$0xff]   ;;  %v606_v23 = vld [vmem:[#allocation10 + $0x50] ss:$8 sps:$4 sm:$0xff]   ;;  %v611_v24 = vld [vmem:[#allocation10 + $0x64] ss:$8 sps:$4 sm:$0xff]  }
  0x63   :  { %552 = vmatprep.subr.bf16.mxu1 %v796_v0  ;;  %390 = vmatprep.subr.bf16.mxu0 %v596_v14  ;;  %v609_v25 = vld [vmem:[#allocation10 + $0x60] ss:$8 sps:$4 sm:$0xff]   ;;  %v614_v34 = vld [vmem:[#allocation10 + $0x74] ss:$8 sps:$4 sm:$0xff]   ;;  %v612_v35 = vld [vmem:[#allocation10 + $0x70] ss:$8 sps:$4 sm:$0xff]   ;;  %p741_p2 = pnand %p740_p1, %p734_p12 }
  0x64   :  { %v500_v26 = vld [vmem:[%s969_s3] ss:$0 sm:$0xff]  ;;  %420 = vmatprep.mubr.bf16.mxu0 %v798_v36  ;;  %v304_v47 = vsub.s32 1, %v299_v46  ;;  %v300_v58 = vsub.s32 0, %v299_v46  ;;  %v433_v60 = vld [vmem:[#allocation5] sm:$0xff] }
  0x65   :  { %v503_v37 = vld [vmem:[%s971_s5] ss:$0 sm:$0xff] }
  0x66   :  { %553 = vmatpush3.bf16.msra.mxu1 %v585_v6  ;;  %391 = vmatpush1.bf16.msra.mxu0 %v594_v15  ;;  %v296_v48 = vld [vmem:[%s973_s7] sm:$0x3] }
  0x67   :  { %554 = vmatprep.subr.bf16.mxu1 %v796_v0  ;;  %392 = vmatprep.subr.bf16.mxu0 %v599_v16  ;;  %v305_v49 = vrot.slane %v296_v48, %v304_v47  ;;  %v301_v59 = vrot.slane %v296_v48, %v300_v58  ;;  %v529_v2 = vld [vmem:[%s974_s8] ss:$0 sm:$0xff] }
  0x68   :  { %v530_v4 = vld [vmem:[%s975_s9] ss:$0 sm:$0xff] }
  0x6a   :  { %555 = vmatpush3.bf16.msra.mxu1 %v586_v7  ;;  %393 = vmatpush1.bf16.msra.mxu0 %v597_v17 }
  0x6b   :  { %556 = vmatprep.subr.bf16.mxu1 %v796_v0  ;;  %394 = vmatprep.subr.bf16.mxu0 %v602_v18 }
  0x6e   :  { %557 = vmatpush3.bf16.msra.mxu1 %v587_v8  ;;  %395 = vmatpush1.bf16.msra.mxu0 %v600_v19 }
  0x6f   :  { %558 = vmatprep.subr.bf16.mxu1 %v796_v0  ;;  %396 = vmatprep.subr.bf16.mxu0 %v605_v20 }
  0x72   :  { %559 = vmatpush3.bf16.msra.mxu1 %v588_v9  ;;  %397 = vmatpush1.bf16.msra.mxu0 %v603_v21 }
  0x73   :  { %560 = vmatprep.subr.bf16.mxu1 %v796_v0  ;;  %398 = vmatprep.subr.bf16.mxu0 %v608_v22 }
  0x76   :  { %561 = vmatpush3.bf16.msra.mxu1 %v589_v10  ;;  %399 = vmatpush1.bf16.msra.mxu0 %v606_v23 }
  0x77   :  { %562 = vmatprep.subr.bf16.mxu1 %v796_v0  ;;  %400 = vmatprep.subr.bf16.mxu0 %v611_v24 }
  0x7a   :  { %563 = vmatpush3.bf16.msra.mxu1 %v590_v11  ;;  %401 = vmatpush1.bf16.msra.mxu0 %v609_v25 }
  0x7b   :  { %402 = vmatprep.subr.bf16.mxu0 %v614_v34 }
  0x7e   :  { %403 = vmatpush1.bf16.msra.mxu0 %v612_v35 }
 0x134   :  { %v159_v27 = vpop.f32.mrb[0].mxu0 }
 0x135   :  { %v160_v28 = vadd.f32 %v500_v26, %v159_v27  ;;  %v546_v29 = vpop.f32.mrb[1].mxu0 }
 0x136   :  { %v162_v30 = vpop.f32.mrb[2].mxu0 }
 0x137   :  { %v165_v31 = vmax.f32 %v160_v28, 0.0  ;;  %v547_v32 = vpop.f32.mrb[3].mxu0 }
 0x139   :  { %v166_v33 = vpack.c.bf16 %v165_v31, %v165_v31 }
 0x13b   :  { %565 = vmatmul.mubr.bf16.vlgmr.msra.gmra.mrb[0].mxu1 %v166_v33 }
 0x20e   :  { %v272_v38 = vpop.f32.mrb[0].mxu1 }
 0x20f   :  { %v273_v39 = vadd.f32 %v503_v37, %v272_v38  ;;  %v566_v40 = vpop.f32.mrb[1].mxu1 }
 0x210   :  { %v275_v41 = vpop.f32.mrb[2].mxu1 }
 0x211   :  { %v278_v42 = vmax.f32 %v273_v39, 0.0  ;;  %v567_v43 = vpop.f32.mrb[3].mxu1 }
 0x213   :  { %v279_v44 = vpack.c.bf16 %v278_v42, %v278_v42 }
 0x215   :  { %421 = vmatmul.mubr.bf16.vlgmr.msra.gmra.mrb[4].mxu0 %v279_v44 }
 0x2e8   :  { %v422_v50 = vpop.f32.mrb[4].mxu0 }
 0x2e9   :  { %v424_v51 = vpop.f32.mrb[5].mxu0  ;;  %v423_v62 = vadd.f32 %v422_v50, %v301_v59 }
 0x2ea   :  { %v425_v52 = vadd.f32 %v424_v51, %v305_v49  ;;  %v426_v53 = vpop.f32.mrb[6].mxu0 }
 0x2eb   :  { %v427_v54 = vpop.f32.mrb[7].mxu0 }
 0x2ec   :  { %v429_v55 = vmax.f32 %v425_v52, -4.0 }
 0x2ee   :  { %v430_v56 = vmin.f32 %v429_v55, 2.0 }
 0x2f0   :  { %v431_v57 = vmul.f32 1.442695, %v430_v56 }
 0x2f2   :  { %615 = vpow2.f32 %v431_v57 }
 0x2fc   :  { %v616_v61 = vpop.eup %615 }
 0x2fd   :  { %v434_v63 = vmul.f32 %v616_v61, %v433_v60  ;;  %v436_v0 = vadd.f32 1e-06, %v616_v61 }
 0x2ff   :  { %v435_v1 = vadd.f32 %v434_v63, %v423_v62 }
 0x301   :  { %617 = vtanh.f32 %v435_v1 }
 0x302   :  { %619 = vrcp.f32 %v436_v0 }
 0x30b   :  { %v618_v3 = vpop.eup %617 }
 0x30c   :  { %v620_v5 = vpop.eup %619  ;;  %v445_v6 = vmul.f32 %v618_v3, %v618_v3  ;;  %v458_v7 = vmul.f32 %v618_v3, %v529_v2 }
 0x30d   :  { %v438_v10 = vmul.f32 %v620_v5, %v434_v63 }
 0x30e   :  { %v446_v8 = vsub.f32 1.0, %v445_v6  ;;  %v466_v9 = vadd.f32 %v530_v4, %v458_v7 }
 0x310   :  { %v453_v11 = vmul.f32 %v529_v2, %v446_v8  ;;  %468 = vst [vmem:[#allocation12] sm:$0xff] %v466_v9 }
 0x311   :  { %744 = shalt.err (!%p741_p2)
}
 0x312   :  { %s745_s13 = scalar_lea.hbm %s977_s11, 128 }
 0x313   :  { %p746_p3 = scmp.ne.s32.totalorder %s977_s11, %s745_s13  ;;  %p749_p4 = scmp.lt.u32.totalorder %s745_s13, %s977_s11 }
 0x315   :  { %p751_p5 = pnand %p749_p4, %p746_p3 }
 0x317   :  { %754 = shalt.err (!%p751_p5)
}
 0x318   :  { %488 = dma.vmem_to_hbm [thread:$0]  %s486_s27, 128, %s977_s11, [#allocation13]   ;;  %v454_v12 = vadd.f32 1e-06, %v453_v11  ;;  %v439_v13 = vmul.f32 -0.5, %v438_v10 }
 0x319   :  { %s800_s30 = smov [#allocation11]  }
 0x31a   :  { %621 = vlog2.f32 %v454_v12  ;;  %v440_v14 = vmul.f32 %v439_v13, %v438_v10  ;;  %s475_s16 = sshll.u32 %s800_s30, 4  ;;  %s476_s16 = int_to_ptr.vmem [resolvable:$true] %s475_s16 }
 0x31b   :  { %s755_s19 = scalar_lea.vmem %s476_s16, 128  ;;  %p760_p7 = scmp.lt.s32.totalorder %s476_s16, %s476_s16 }
 0x31c   :  { %v441_v15 = vsub.f32 %v440_v14, %v430_v56  ;;  %p756_p6 = scmp.ne.s32.totalorder %s476_s16, %s755_s19  ;;  %p761_p8 = scmp.lt.s32.totalorder %s755_s19, %s755_s19 }
 0x31e   :  { %v528_v17 = vadd.f32 -1.4913034, %v441_v15  ;;  %p762_p9 = por %p761_p8, %p760_p7 }
 0x320   :  { %p763_p10 = pnand %p762_p9, %p756_p6 }
 0x324   :  { %v622_v16 = vpop.eup %621 }
 0x325   :  { %v456_v18 = vmul.f32 0.6931472, %v622_v16 }
 0x327   :  { %v457_v19 = vsub.f32 %v528_v17, %v456_v18 }
 0x329   :  { %467 = vst [vmem:[#allocation11] sm:$0xff] %v457_v19 }
 0x32a   :  { %766 = shalt.err (!%p763_p10)
}
 0x32b   :  { %s767_s18 = scalar_lea.hbm %s976_s10, 128 }
 0x32c   :  { %p768_p11 = scmp.ne.s32.totalorder %s976_s10, %s767_s18  ;;  %p771_p12 = scmp.lt.u32.totalorder %s767_s18, %s976_s10 }
 0x32e   :  { %p773_p13 = pnand %p771_p12, %p768_p11 }
 0x330   :  { %776 = shalt.err (!%p773_p13)
}
 0x331   :  { %478 = dma.vmem_to_hbm [thread:$0]  %s476_s16, 128, %s976_s10, [#allocation4]  }
 0x332   :  { %783 = dma.done.wait [#allocation4], 128  }
 0x333   :  { %784 = vsyncadd [#allocation4], 4294967168 }
 0x334   :  { %785 = dma.done.wait [#allocation13], 128  }
 0x335   :  { %786 = vsyncadd [#allocation13], 4294967168 }
 0x336   :  { %495 = vsyncpa [#allocation3], 1 }
 0x337   :  { %496 = vsyncpa [#allocation6], 1 }
 0x338   :  { %497 = vsyncpa [#allocation9], 1 }
 0x339   :  { %498 = vsyncpa [#allocation4], 1 }
 0x33a   :  { %499 = vsyncpa [#allocation13], 1 }

</bundles_post_ra>
